<compile_context>
chip_gen: v5e
topology: v5e:2x2
jax: 0.10.0
libtpu: 0.0.40
codegen_flags: <defaults>
</compile_context>

<pallas_src>
import math

import jax
import jax.numpy as jnp
from jax.experimental import pallas as pl
from jax.experimental.pallas import tpu as pltpu

_LANES = 128


def _round_up(x, m):
    return ((x + m - 1) // m) * m


def _cdiv(a, b):
    return (a + b - 1) // b


def _default_block_rows():
    # Rows of the lane-dense [rows, 128] slab per grid step.
    #   v5e/v6e: 2048 rows (8 MiB total double-buffered in f32) — amortizes the
    #            per-step overhead and respects v5e's 16 MiB scoped-VMEM default.
    #   v7x    : 4096 rows (16 MiB double-buffered, < 32 MiB scoped default) to
    #            keep the 3.2 TB/s HBM stream fed.
    try:
        kind = jax.devices()[0].device_kind.lower()
    except Exception:  # pragma: no cover - no devices at trace time
        return 2048
    return 4096 if "7" in kind else 2048


def _mse_with_logits_kernel(tg_conf_ref, tg_obj_ref, pred_conf_ref, loss_ref):
    # Inputs stay in their HBM dtype; upcast to f32 only inside the kernel.
    tg_conf = tg_conf_ref[...].astype(jnp.float32)
    tg_obj = tg_obj_ref[...]                       # f32 / int8 — compared natively
    logits = pred_conf_ref[...].astype(jnp.float32)

    # sigmoid + clamp(1e-4, 1 - 1e-4)   (sigmoid runs on the EUP slot)
    pred = jax.nn.sigmoid(logits)
    pred = jnp.clip(pred, 0.0001, 1.0 - 0.0001)

    diff = tg_conf - pred
    obj_loss = 5.0 * (diff * diff)     # cells where tg_obj == 1
    noobj_loss = pred * pred           # cells where tg_obj == 0

    # Cells where tg_obj is neither exactly 0 nor exactly 1 contribute 0 — same
    # exact-equality semantics as the PyTorch reference (both masks are 0 there).
    loss = jnp.where(tg_obj == 1, obj_loss,
                     jnp.where(tg_obj == 0, noobj_loss, 0.0))
    loss_ref[...] = loss.astype(loss_ref.dtype)


def mse_with_logits_loss(tg_conf, tg_obj, pred_conf, *, block_rows=None):
    """Elementwise YOLOv2 confidence loss; returns a tensor of the input shape.

    Inputs keep their caller dtype (f32/bf16 conf tensors; f32/int8/bool mask).
    Output dtype is the promoted dtype of (tg_conf, pred_conf).
    """
    assert tg_conf.shape == tg_obj.shape == pred_conf.shape
    orig_shape = tg_conf.shape
    total = int(math.prod(orig_shape))

    out_dtype = jnp.result_type(tg_conf.dtype, pred_conf.dtype)
    if not jnp.issubdtype(out_dtype, jnp.floating):
        out_dtype = jnp.float32

    if total == 0:
        return jnp.zeros(orig_shape, out_dtype)

    # bool refs can be finicky to lower; a bool->int8 copy is 2 B/elem total,
    # far cheaper than reading the mask as f32.
    if tg_obj.dtype == jnp.bool_:
        tg_obj = tg_obj.astype(jnp.int8)

    if block_rows is None:
        block_rows = _default_block_rows()

    # Native sublane tile of the narrowest dtype involved (f32:8, bf16:16, i8:32)
    # — keeps every block aligned to hardware tiling for packed dtypes.
    min_itemsize = min(jnp.dtype(t.dtype).itemsize for t in (tg_conf, tg_obj, pred_conf))
    min_itemsize = min(min_itemsize, jnp.dtype(out_dtype).itemsize)
    granule = max(8, 32 // max(min_itemsize, 1))

    rows = _cdiv(total, _LANES)
    padded_rows = _round_up(rows, granule)          # <= 32*128 elems of padding
    padded_total = padded_rows * _LANES

    if padded_rows < 2 * granule:
        tm = padded_rows                            # tiny input: one full-extent block
    else:
        # At least 2 grid blocks (feeds both v7x TensorCores, enables DMA overlap),
        # capped at the generation-tuned tile size.
        tm = min(_round_up(block_rows, granule),
                 _round_up(_cdiv(padded_rows, 2), granule))
    grid_len = _cdiv(padded_rows, tm)               # partial edge block handled by Pallas

    def _prep(x):
        x = x.reshape(-1)
        if padded_total != total:
            # Only fires when total is not already a multiple of granule*128.
            x = jnp.pad(x, (0, padded_total - total))
        return x.reshape(padded_rows, _LANES)

    a = _prep(tg_conf)
    b = _prep(tg_obj)
    c = _prep(pred_conf)

    spec = pl.BlockSpec((tm, _LANES), lambda i: (i, 0))

    io_bytes = (a.dtype.itemsize + b.dtype.itemsize + c.dtype.itemsize
                + jnp.dtype(out_dtype).itemsize)
    cost = pl.CostEstimate(
        flops=9 * padded_total,
        transcendentals=padded_total,               # one sigmoid per element
        bytes_accessed=padded_total * io_bytes,
    )

    out = pl.pallas_call(
        _mse_with_logits_kernel,
        out_shape=jax.ShapeDtypeStruct((padded_rows, _LANES), out_dtype),
        grid_spec=pltpu.PrefetchScalarGridSpec(
            num_scalar_prefetch=0,
            grid=(grid_len,),
            in_specs=[spec, spec, spec],
            out_specs=spec,
        ),
        compiler_params=pltpu.CompilerParams(
            dimension_semantics=("parallel",),      # megacore-shardable
        ),
        cost_estimate=cost,
    )(a, b, c)

    out = out.reshape(-1)
    if padded_total != total:
        out = out[:total]
    return out.reshape(orig_shape)


def _reference(tg_conf, tg_obj, pred_conf):
    pred = jnp.clip(jax.nn.sigmoid(pred_conf), 0.0001, 1.0 - 0.0001)
    mask_1 = (tg_obj == 0.0).astype(pred.dtype)
    mask_2 = (tg_obj == 1.0).astype(pred.dtype)
    loss2 = mask_2 * 5.0 * (tg_conf - pred) ** 2
    loss1 = mask_1 * 1.0 * pred ** 2
    return loss2 + loss1


if __name__ == "__main__":
    key = jax.random.PRNGKey(0)
    k1, k2, k3, k4, k5, k6, k7, k8, k9 = jax.random.split(key, 9)

    # 1) f32, canonical YOLOv2 confidence map: batch=2, anchors=4, 16x16 grid.
    N, C, H, W = 2, 4, 16, 16
    pred_conf = jax.random.normal(k1, (N, C, H, W), dtype=jnp.float32)    # logits
    tg_conf = jax.random.uniform(k2, (N, C, H, W), dtype=jnp.float32)     # IoU-like target
    tg_obj = (jax.random.uniform(k3, (N, C, H, W)) > 0.8).astype(jnp.float32)

    loss = mse_with_logits_loss(tg_conf, tg_obj, pred_conf)
    jax.block_until_ready(loss)
    ref = _reference(tg_conf, tg_obj, pred_conf)
    assert loss.shape == (N, C, H, W) and loss.dtype == jnp.float32
    assert jnp.allclose(loss, ref, atol=1e-6, rtol=1e-5), "mismatch vs reference (f32)"

    # 2) Awkward shape (total not a multiple of 128): exercises the small-pad path.
    shp = (2, 5, 13, 7)
    pred_conf2 = jax.random.normal(k4, shp, dtype=jnp.float32)
    tg_conf2 = jax.random.uniform(k5, shp, dtype=jnp.float32)
    tg_obj2 = (jax.random.uniform(k6, shp) > 0.8).astype(jnp.float32)
    loss2 = mse_with_logits_loss(tg_conf2, tg_obj2, pred_conf2)
    jax.block_until_ready(loss2)
    ref2 = _reference(tg_conf2, tg_obj2, pred_conf2)
    assert loss2.shape == shp
    assert jnp.allclose(loss2, ref2, atol=1e-6, rtol=1e-5), "mismatch vs reference (padded path)"

    # 3) Native-dtype path: bf16 conf tensors + int8 objectness mask (no wrapper
    #    casts to f32 -> roughly half the HBM traffic for bf16 callers).
    pred_conf3 = jax.random.normal(k7, (N, C, H, W), dtype=jnp.bfloat16)
    tg_conf3 = jax.random.uniform(k8, (N, C, H, W), dtype=jnp.bfloat16)
    tg_obj3 = (jax.random.uniform(k9, (N, C, H, W)) > 0.8).astype(jnp.int8)
    loss3 = mse_with_logits_loss(tg_conf3, tg_obj3, pred_conf3)
    jax.block_until_ready(loss3)
    ref3 = _reference(tg_conf3.astype(jnp.float32),
                      tg_obj3.astype(jnp.float32),
                      pred_conf3.astype(jnp.float32))
    assert loss3.dtype == jnp.bfloat16
    assert jnp.allclose(loss3.astype(jnp.float32), ref3, atol=2e-2, rtol=2e-2), \
        "mismatch vs reference (bf16/int8 path)"

    print("KERNEL_OK")
</pallas_src>

<mosaic_0001>
module attributes {stable_mosaic.version = 11 : i64} {
  func.func @_mse_with_logits_kernel(%arg0: i32, %arg1: memref<8x128xf32, #tpu.memory_space<vmem>>, %arg2: memref<8x128xf32, #tpu.memory_space<vmem>>, %arg3: memref<8x128xf32, #tpu.memory_space<vmem>>, %arg4: memref<8x128xf32, #tpu.memory_space<vmem>>) attributes {dimension_semantics = [#tpu.dimension_semantics<parallel>], iteration_bounds = array<i64: 2>, scalar_prefetch = 0 : i64, scratch_operands = 0 : i64, tpu.core_type = #tpu.core_type<tc>, window_params = [{transform_indices = @transform_0, window_bounds = array<i64: 8, 128>}, {transform_indices = @transform_1, window_bounds = array<i64: 8, 128>}, {transform_indices = @transform_2, window_bounds = array<i64: 8, 128>}, {transform_indices = @transform_3, window_bounds = array<i64: 8, 128>}]} {
    %c0 = arith.constant 0 : index
    %c0_0 = arith.constant 0 : index
    %0 = vector.load %arg1[%c0, %c0_0] : memref<8x128xf32, #tpu.memory_space<vmem>>, vector<8x128xf32>
    %c0_1 = arith.constant 0 : index
    %c0_2 = arith.constant 0 : index
    %1 = vector.load %arg2[%c0_1, %c0_2] : memref<8x128xf32, #tpu.memory_space<vmem>>, vector<8x128xf32>
    %c0_3 = arith.constant 0 : index
    %c0_4 = arith.constant 0 : index
    %2 = vector.load %arg3[%c0_3, %c0_4] : memref<8x128xf32, #tpu.memory_space<vmem>>, vector<8x128xf32>
    %3 = arith.negf %2 : vector<8x128xf32>
    %4 = math.exp %3 : vector<8x128xf32>
    %cst = arith.constant 1.000000e+00 : f32
    %5 = vector.broadcast %cst : f32 to vector<8x128xf32>
    %6 = arith.addf %5, %4 : vector<8x128xf32>
    %7 = arith.divf %5, %6 : vector<8x128xf32>
    %cst_5 = arith.constant 9.99999974E-5 : f32
    %cst_6 = arith.constant 0.999899983 : f32
    %8 = vector.broadcast %cst_5 : f32 to vector<8x128xf32>
    %9 = arith.maximumf %8, %7 : vector<8x128xf32>
    %10 = vector.broadcast %cst_6 : f32 to vector<8x128xf32>
    %11 = arith.minimumf %10, %9 : vector<8x128xf32>
    %12 = arith.subf %0, %11 : vector<8x128xf32>
    %13 = arith.mulf %12, %12 : vector<8x128xf32>
    %cst_7 = arith.constant 5.000000e+00 : f32
    %14 = vector.broadcast %cst_7 : f32 to vector<8x128xf32>
    %15 = arith.mulf %14, %13 : vector<8x128xf32>
    %16 = arith.mulf %11, %11 : vector<8x128xf32>
    %cst_8 = arith.constant 1.000000e+00 : f32
    %17 = vector.broadcast %cst_8 : f32 to vector<8x128xf32>
    %18 = arith.cmpf oeq, %1, %17 : vector<8x128xf32>
    %cst_9 = arith.constant 0.000000e+00 : f32
    %19 = vector.broadcast %cst_9 : f32 to vector<8x128xf32>
    %20 = arith.cmpf oeq, %1, %19 : vector<8x128xf32>
    %cst_10 = arith.constant 0.000000e+00 : f32
    %21 = vector.broadcast %cst_10 : f32 to vector<8x128xf32>
    %22 = arith.select %20, %16, %21 : vector<8x128xi1>, vector<8x128xf32>
    %23 = arith.select %18, %15, %22 : vector<8x128xi1>, vector<8x128xf32>
    %c0_11 = arith.constant 0 : index
    %c0_12 = arith.constant 0 : index
    %24 = vector.load %arg4[%c0_11, %c0_12] : memref<8x128xf32, #tpu.memory_space<vmem>>, vector<8x128xf32>
    tpu.vector_store %arg4[%c0_11, %c0_12], %23 {strides = array<i32>} : memref<8x128xf32, #tpu.memory_space<vmem>>, vector<8x128xf32>,
    return
  }
  func.func @transform_0(%arg0: i32) -> (i32, i32) {
    %c0_i32 = arith.constant 0 : i32
    %c0_i32_0 = arith.constant 0 : i32
    return %arg0, %c0_i32 : i32, i32
  }
  func.func @transform_1(%arg0: i32) -> (i32, i32) {
    %c0_i32 = arith.constant 0 : i32
    %c0_i32_0 = arith.constant 0 : i32
    return %arg0, %c0_i32 : i32, i32
  }
  func.func @transform_2(%arg0: i32) -> (i32, i32) {
    %c0_i32 = arith.constant 0 : i32
    %c0_i32_0 = arith.constant 0 : i32
    return %arg0, %c0_i32 : i32, i32
  }
  func.func @transform_3(%arg0: i32) -> (i32, i32) {
    %c0_i32 = arith.constant 0 : i32
    %c0_i32_0 = arith.constant 0 : i32
    return %arg0, %c0_i32 : i32, i32
  }
}

</mosaic_0001>

<bundles_post_ra>
// kernel: tpu_custom_call.1
= control target key start
LH: loop header
LB: loop body
LE: loop exit
PB: predicated region body
PF: predicated region fallthrough
CT: control target
= control target key end

     0   :  { %s874_s0 = inlined_call_operand.hbm [shape: f32[16,128], index: 0, kind: input, shape index: {}]   ;;  %s875_s1 = inlined_call_operand.hbm [shape: f32[16,128], index: 1, kind: input, shape index: {}]   ;;  %s876_s2 = inlined_call_operand.hbm [shape: f32[16,128], index: 2, kind: input, shape index: {}]   ;;  %s877_s3 = inlined_call_operand.hbm [shape: f32[16,128], index: 3, kind: output, shape index: {}]  }
   0x1   :  { %878 = sst [smem:[#allocation13_spill]] %s875_s1 }
   0x2   :  { %8 = vsyncpa [#allocation3], 0 }
   0x3   :  { %10 = vsyncpa [#allocation3 + $0x1], 0 }
   0x4   :  { %11 = vsyncpa [#allocation6], 0 }
   0x5   :  { %13 = vsyncpa [#allocation6 + $0x1], 0 }
   0x6   :  { %14 = vsyncpa [#allocation4], 0 }
   0x7   :  { %16 = vsyncpa [#allocation4 + $0x1], 0  ;;  %s686_s12 = smov 0   ;;  %s688_s13 = smov 0  }
   0x8   :  { %s690_s14 = smov 0   ;;  %s692_s15 = smov 0  }
   0x9 LB: > { %s707_s16 = sadd.s32 4294967295, %s664_s15   ;;  %s425_s17 = sadd.s32 4294967294, %s664_s15   ;;  %s664_s15 = sphi %s692_s15, %s890_s15   ;;  %s660_s14 = sphi %s690_s14, %s889_s14   ;;  %s656_s13 = sphi %s688_s13, %s888_s13   ;;  %s652_s12 = sphi %s686_s12, %s887_s12  }
   0xa   : > { %s711_s18 = sadd.s32 1, %s664_s15   ;;  %s29_s19 = sadd.s32 1, %s660_s14 }
   0xb   : > { %s26_s20 = ssub.s32 %s664_s15, %s711_s18  ;;  %p36_p0 = scmp.ne.s32.totalorder %s660_s14, %s656_s13 }
   0xc   : > { %p27_p1 = scmp.eq.s32.totalorder %s26_s20, 0  ;;  %p37_p2 = scmp.eq.s32.totalorder %s664_s15, 0 }
   0xd   : > { %p42_p3 = scmp.ne.s32.totalorder %s656_s13, %s652_s12  ;;  %p43_p4 = scmp.eq.s32.totalorder %s707_s16, 0 }
   0xe   : > { %s723_s21 = scalar_select %p27_p1, %s660_s14, %s29_s19  }
   0xf   : > { %p38_p5 = por %p37_p2, %p36_p0  ;;  %p725_p6 = por %p43_p4, %p42_p3 }
  0x10   : > { %879 = sst [smem:[#allocation12_spill]] %s723_s21  ;;  %p118_p7 = scmp.eq.s32.totalorder %s707_s16, 1 }
  0x11   : > { %p124_p8 = scmp.eq.s32.totalorder %s425_s17, 1  ;;  %p427_p9 = scmp.ge.s32.totalorder %s664_s15, 2 }
  0x12   : > { %p466_p10 = scmp.lt.s32.totalorder %s664_s15, 2  ;;  %p732_p11 = por %p118_p7, %p36_p0 }
  0x13   : > { %p736_p12 = por %p124_p8, %p42_p3  ;;  %s144_s25 = sand.u32 1, %s660_s14  }
  0x14   : > { %s742_s26 = sshll.u32 %s664_s15, 3  ;;  %s746_s27 = sshll.u32 %s144_s25, 3 }
  0x15   : > { %p748_p13 = pnand %p466_p10, %p38_p5  ;;  %s163_s29 = sand.u32 1, %s664_s15  }
  0x16   : > { %s884_s1 = sld [smem:[#allocation13_spill]]  ;;  %s167_s6 = scalar_lea.vmem [#allocation5], %s746_s27 }
  0x17   : > { %s175_s7 = sshll.u32 %s167_s6, 4  ;;  %p434_p0 = scmp.ge.s32.totalorder %s664_s15, 1  ;;  %s176_s7 = int_to_ptr.vmem [resolvable:$true] %s175_s7 }
  0x18   : > { %s759_s9 = scalar_lea.sflag [#allocation6], %s163_s29  ;;  %p508_p2 = pneg %p748_p13 }
  0x1c   : > { %s171_s5 = scalar_lea.hbm %s884_s1, %s742_s26  ;;  %s511_s20 = scalar_lea.hbm %s884_s1, 16 }
  0x1d   : > { %s173_s8 = sshll.u32 %s171_s5, 4  ;;  %s174_s8 = int_to_ptr.hbm [resolvable:$true] %s173_s8 }
  0x1e   : > { %s504_s10 = sshra.s32 %s174_s8, 4  ;;  %s505_s10 = int_to_ptr.hbm [resolvable:$true] %s504_s10 }
  0x1f   : > { %s506_s11 = scalar_lea.hbm %s505_s10, 8  ;;  %p512_p5 = scmp.lt.s32.totalorder %s505_s10, %s884_s1 }
  0x20   : > { %p507_p1 = scmp.ne.s32.totalorder %s505_s10, %s506_s11  ;;  %p513_p7 = scmp.lt.s32.totalorder %s511_s20, %s506_s11 }
  0x22   : > { %p509_p3 = pnand %p508_p2, %p507_p1  ;;  %p514_p8 = por %p513_p7, %p512_p5 }
  0x24   : > { %p510_p4 = pneg %p509_p3 }
  0x26   : > { %p515_p10 = pnand %p514_p8, %p510_p4 }
  0x28   : > { %518 = shalt.err (!%p515_p10)
}
  0x29   : > { %458 = dma.hbm_to_vmem [thread:$0]  (!%p748_p13), %s174_s8, 128, %s176_s7, %s759_s9  }
  0x2a   : > { %p199_p1 = scmp.lt.s32.totalorder %s664_s15, 3  ;;  %s152_s6 = scalar_lea.hbm %s874_s0, %s742_s26 }
  0x2b   : > { %s154_s11 = sshll.u32 %s152_s6, 4  ;;  %s148_s17 = scalar_lea.vmem [#allocation2], %s746_s27  ;;  %s155_s11 = int_to_ptr.hbm [resolvable:$true] %s154_s11 }
  0x2c   : > { %p782_p3 = pnand %p434_p0, %p199_p1  ;;  %s156_s19 = sshll.u32 %s148_s17, 4  ;;  %s157_s19 = int_to_ptr.vmem [resolvable:$true] %s156_s19 }
  0x2d   : > { %s145_s20 = scalar_lea.sflag [#allocation3], %s144_s25  ;;  %s534_s30 = sshra.s32 %s155_s11, 4  ;;  %s535_s30 = int_to_ptr.hbm [resolvable:$true] %s534_s30 }
  0x2e   : > { %s536_s7 = scalar_lea.hbm %s535_s30, 8  ;;  %s541_s29 = scalar_lea.hbm %s874_s0, 16 }
  0x2f   : > { %p537_p4 = scmp.ne.s32.totalorder %s535_s30, %s536_s7  ;;  %p542_p0 = scmp.lt.s32.totalorder %s535_s30, %s874_s0 }
  0x30   : > { %p543_p8 = scmp.lt.s32.totalorder %s541_s29, %s536_s7 }
  0x31   : > { %p539_p5 = pnand %p537_p4, %p508_p2 }
  0x32   : > { %p544_p10 = por %p543_p8, %p542_p0 }
  0x33   : > { %p540_p7 = pneg %p539_p5 }
  0x35   : > { %p545_p1 = pnand %p544_p10, %p540_p7 }
  0x37   : > { %548 = shalt.err (!%p545_p1)
}
  0x38   : > { %455 = dma.hbm_to_vmem [thread:$0]  (!%p748_p13), %s155_s11, 128, %s157_s19, %s145_s20  }
  0x39   : > { %s190_s1 = scalar_lea.hbm %s876_s2, %s742_s26  ;;  %s186_s8 = scalar_lea.vmem [#allocation7], %s746_s27 }
  0x3a   : > { %s194_s4 = sshll.u32 %s186_s8, 4  ;;  %s192_s21 = sshll.u32 %s190_s1, 4  ;;  %s195_s4 = int_to_ptr.vmem [resolvable:$true] %s194_s4  ;;  %s193_s21 = int_to_ptr.hbm [resolvable:$true] %s192_s21 }
  0x3b   : > { %s564_s30 = sshra.s32 %s193_s21, 4  ;;  %s571_s11 = scalar_lea.hbm %s876_s2, 16  ;;  %s565_s30 = int_to_ptr.hbm [resolvable:$true] %s564_s30 }
  0x3c   : > { %s566_s7 = scalar_lea.hbm %s565_s30, 8  ;;  %p572_p0 = scmp.lt.s32.totalorder %s565_s30, %s876_s2 }
  0x3d   : > { %p567_p4 = scmp.ne.s32.totalorder %s565_s30, %s566_s7  ;;  %p573_p8 = scmp.lt.s32.totalorder %s571_s11, %s566_s7 }
  0x3f   : > { %p569_p5 = pnand %p567_p4, %p508_p2  ;;  %p574_p10 = por %p573_p8, %p572_p0 }
  0x41   : > { %p570_p7 = pneg %p569_p5 }
  0x43   : > { %p575_p1 = pnand %p574_p10, %p570_p7 }
  0x45   : > { %578 = shalt.err (!%p575_p1)
}
  0x46   : > { %461 = dma.hbm_to_vmem [thread:$0]  (!%p748_p13), %s193_s21, 128, %s195_s4, %s759_s9  }
  0x47   : > { %203 = sbr.rel (%p782_p3) target bundleno = 124 (0x7c), region = 32  ;;  %s820_s1 = sand.u32 (!%p782_p3), 1, %s656_s13  }
  0x48   : > { %s823_s26 = sshll.u32 (!%p782_p3), %s820_s1, 3  ;;  %s206_s27 = scalar_lea.sflag (!%p782_p3), [#allocation3], %s820_s1 }
  0x49   : > { %s209_s6 = scalar_lea.vmem (!%p782_p3), [#allocation2], %s823_s26 }
  0x4c   : > { %639 = dma.done.wait (%p725_p6), %s206_s27, 128  }
  0x4d   : > { %641 = vsyncadd (%p725_p6), %s206_s27, 4294967168  ;;  %s215_s21 = sand.u32 1, %s707_s16   ;;  %s219_s9 = scalar_lea.vmem [#allocation5], %s823_s26 }
  0x4e   : > { %s216_s28 = scalar_lea.sflag [#allocation6], %s215_s21 }
  0x4f   : > { %643 = dma.done.wait (%p725_p6), %s216_s28, 256  }
  0x50   : > { %645 = vsyncadd (%p725_p6), %s216_s28, 4294967040  ;;  %s229_s10 = scalar_lea.vmem [#allocation7], %s823_s26  ;;  %s441_s22 = sshll.u32 %s707_s16, 3  ;;  %v263_v15 = vld [vmem:[%s209_s6] sm:$0xff]  ;;  %v264_v16 = vld [vmem:[%s219_s9] sm:$0xff] }
  0x51   : > { %v265_v0 = vld [vmem:[%s229_s10] sm:$0xff]  ;;  %s307_s8 = scalar_lea.hbm %s877_s3, %s441_s22  ;;  %vm292_vm4 = vcmp.eq.f32.partialorder %v264_v16, 0.0  ;;  %s262_s4 = scalar_lea.vmem [#allocation8], %s823_s26  ;;  %vm291_vm5 = vcmp.eq.f32.partialorder %v264_v16, 1.0 }
  0x52   : > { %v439_v1 = vmul.f32 -1.442695, %v265_v0  ;;  %s309_s30 = sshll.u32 %s262_s4, 4  ;;  %s311_s7 = sshll.u32 %s307_s8, 4  ;;  %s310_s30 = int_to_ptr.vmem [resolvable:$true] %s309_s30  ;;  %s312_s7 = int_to_ptr.hbm [resolvable:$true] %s311_s7 }
  0x53   : > { %s297_s16 = scalar_lea.sflag [#allocation4], %s820_s1  ;;  %s608_s29 = sshra.s32 %s312_s7, 4  ;;  %s609_s29 = int_to_ptr.hbm [resolvable:$true] %s608_s29 }
  0x54   : > { %500 = vpow2.f32 %v439_v1  ;;  %s610_s5 = scalar_lea.hbm %s609_s29, 8  ;;  %s614_s20 = scalar_lea.hbm %s877_s3, 16 }
  0x55   : > { %p611_p6 = scmp.ne.s32.totalorder %s609_s29, %s610_s5  ;;  %p615_p3 = scmp.lt.s32.totalorder %s609_s29, %s877_s3 }
  0x56   : > { %p616_p4 = scmp.lt.s32.totalorder %s614_s20, %s610_s5 }
  0x57   : > { %p612_p13 = pnand %p611_p6, %p732_p11 }
  0x58   : > { %p617_p5 = por %p616_p4, %p615_p3 }
  0x59   : > { %p613_p2 = pneg %p612_p13 }
  0x5a   : > { %v501_v2 = vpop.eup %500 }
  0x5b   : > { %v269_v3 = vadd.f32 1.0, %v501_v2  ;;  %p618_p7 = pnand %p617_p5, %p613_p2 }
  0x5d   : > { %502 = vrcp.f32 %v269_v3  ;;  %v281_v6 = vand.u32 2147483648, %v269_v3  ;;  %vm275_vm0 = vweird.f32 %v269_v3  ;;  %v279_v8 = vand.u32 2147483647, %v269_v3 }
  0x5f   : > { %v282_v10 = vor.u32 1.1754944e-38, %v281_v6  ;;  %vm280_vm3 = vcmp.eq.f32.partialorder %v279_v8, 8.507059e+37 }
  0x63   : > { %v503_v4 = vpop.eup %502 }
  0x64   : > { %v271_v5 = vmul.f32 %v503_v4, %v269_v3  ;;  %vm276_vm1 = vweird.f32 %v503_v4 }
  0x65   : > { %vm277_vm2 = vmor %vm275_vm0, %vm276_vm1 }
  0x66   : > { %v272_v7 = vsub.f32 1.0, %v271_v5 }
  0x68   : > { %v273_v9 = vmul.f32 %v503_v4, %v272_v7 }
  0x6a   : > { %v274_v11 = vadd.f32 %v503_v4, %v273_v9 }
  0x6c   : > { %v278_v12 = vsel %vm277_vm2, %v503_v4, %v274_v11 }
  0x6d   : > { %v283_v13 = vsel %vm280_vm3, %v282_v10, %v278_v12 }
  0x6e   : > { %v285_v14 = vmax.f32 %v283_v13, 0.0001 }
  0x70   : > { %v286_v17 = vmin.f32 %v285_v14, 0.9999 }
  0x72   : > { %v287_v18 = vsub.f32 %v263_v15, %v286_v17  ;;  %v290_v19 = vmul.f32 %v286_v17, %v286_v17 }
  0x74   : > { %v288_v20 = vmul.f32 %v287_v18, %v287_v18  ;;  %v293_v21 = vsel %vm292_vm4, %v290_v19, 0.0 }
  0x76   : > { %v289_v22 = vmul.f32 5.0, %v288_v20 }
  0x78   : > { %v294_v23 = vsel %vm291_vm5, %v289_v22, %v293_v21 }
  0x79   : > { %295 = vst [vmem:[%s262_s4] sm:$0xff] %v294_v23 }
  0x7a   : > { %621 = shalt.err (!%p618_p7)
}
  0x7b   : > { %450 = dma.vmem_to_hbm [thread:$0]  (%p732_p11), %s310_s30, 128, %s312_s7, %s297_s16  }
  0x7c PF: > { %s323_s1 = sand.u32 1, %s652_s12   ;;  %p463_p0 = pnand %p427_p9, %p736_p12 }
  0x7d   : > { %s324_s6 = scalar_lea.sflag [#allocation4], %s323_s1 }
  0x7e   : > { %p464_p8 = pneg %p463_p0 }
  0x80   : > { %647 = dma.done.wait (%p464_p8), %s324_s6, 128  }
  0x81   : > { %649 = vsyncadd (%p464_p8), %s324_s6, 4294967168  ;;  %s886_s21 = sld [smem:[#allocation12_spill]]  ;;  %p19_p10 = scmp.ge.s32.totalorder %s711_s18, 4  }
  0x82   : > { %s887_s12 = smov %s656_s13  ;;  %s888_s13 = smov %s660_s14 }
  0x83   : > { %s890_s15 = smov %s711_s18  ;;  %21 = sbr.rel (!%p19_p10) target bundleno = 9 (0x9), region = 101 }
  0x87   : > { %s889_s14 = smov %s886_s21 }
  0x88   :  { %330 = vsyncpa [#allocation3], 1 }
  0x89   :  { %332 = vsyncpa [#allocation3 + $0x1], 1 }
  0x8a   :  { %333 = vsyncpa [#allocation6], 1 }
  0x8b   :  { %335 = vsyncpa [#allocation6 + $0x1], 1 }
  0x8c   :  { %336 = vsyncpa [#allocation4], 1 }
  0x8d   :  { %338 = vsyncpa [#allocation4 + $0x1], 1 }

</bundles_post_ra>
